<compile_context>
chip_gen: v7x
topology: tpu7x:2x2x1
jax: 0.10.0
libtpu: 0.0.40
codegen_flags: <defaults>
</compile_context>

<pallas_src>
import jax
import jax.numpy as jnp
from jax.experimental import pallas as pl
from jax.experimental.pallas import tpu as pltpu

NUM_CLASSES = 4
NUM_ANCHORS = 3
LANES = 128
MAX_TILE_ROWS = 256      # up to 256*128 = 32768 locations per grid step
NUM_CORES = 2            # megacore split (v7x); sequential halves on 1-TC chips
APPROX_RECIP = True      # set False for bit-level parity tests vs the reference

# merged-slab row layout (feature planes)
#   0..3  : pred box x1,y1,x2,y2
#   4..7  : gt   box x1,y1,x2,y2
#   8     : pred objectness logit
#   9     : gt objectness
#   10    : ignore mask
#   11..  : pred class logits (C)
#   11+C..: gt class one-hots (C)
ROW_POBJ = 8
ROW_GOBJ = 9
ROW_IGN = 10
ROW_PCLS = 11
ROW_GCLS = 11 + NUM_CLASSES
NUM_ROWS = 11 + 2 * NUM_CLASSES          # 19

# normalized (w, h) anchors per scale, deterministic
ANCHORS = {
    "l": [[0.279, 0.216], [0.375, 0.476], [0.897, 0.784]],
    "m": [[0.072, 0.147], [0.149, 0.108], [0.142, 0.286]],
    "s": [[0.024, 0.031], [0.038, 0.072], [0.079, 0.055]],
}


def _cdiv(a, b):
    return (a + b - 1) // b


def _round_up(a, b):
    return _cdiv(a, b) * b


# ----------------------------------------------------------------------------
# Pallas kernel: GIoU + BCE-with-logits + masked sum reductions, all scales.
# ----------------------------------------------------------------------------
def _loss_kernel(slab_ref, out_ref):
    # grid = (NUM_CORES, steps): axis 0 is "parallel" (per-core lane range),
    # axis 1 is the "arbitrary" reduction over lane tiles.
    k = pl.program_id(1)

    @pl.when(k == 0)
    def _init():
        out_ref[...] = jnp.zeros_like(out_ref)

    # each plane is a dense (TR, 128) tile (TR a multiple of 8)
    p_x1 = slab_ref[0]
    p_y1 = slab_ref[1]
    p_x2 = slab_ref[2]
    p_y2 = slab_ref[3]
    g_x1 = slab_ref[4]
    g_y1 = slab_ref[5]
    g_x2 = slab_ref[6]
    g_y2 = slab_ref[7]
    p_obj = slab_ref[ROW_POBJ]
    g_obj = slab_ref[ROW_GOBJ]
    ignore = slab_ref[ROW_IGN]

    # --- giou_loss(boxes1=gt, boxes2=pred): matches the torch reference ---
    area_p = (p_x2 - p_x1) * (p_y2 - p_y1)
    area_g = (g_x2 - g_x1) * (g_y2 - g_y1)
    inter_w = jnp.maximum(jnp.minimum(g_x2, p_x2) - jnp.maximum(g_x1, p_x1), 0.0)
    inter_h = jnp.maximum(jnp.minimum(g_y2, p_y2) - jnp.maximum(g_y1, p_y1), 0.0)
    inter_area = inter_w * inter_h
    union_area = area_g + area_p - inter_area
    outer_w = jnp.maximum(jnp.maximum(g_x2, p_x2) - jnp.minimum(g_x1, p_x1), 0.0)
    outer_h = jnp.maximum(jnp.maximum(g_y2, p_y2) - jnp.minimum(g_y1, p_y1), 0.0)
    outer_area = outer_w * outer_h

    # epsilon-guarded EUP reciprocals: padded lanes stay finite and contribute
    # exactly 0 (g_obj == ignore == 0 there); real unions/outers are >> 1e-12.
    inv_union = pl.reciprocal(jnp.maximum(union_area, 1e-12), approx=APPROX_RECIP)
    inv_outer = pl.reciprocal(jnp.maximum(outer_area, 1e-12), approx=APPROX_RECIP)
    ious = inter_area * inv_union
    giou = ious - (outer_area - union_area) * inv_outer
    giou_loss = 1.0 - giou

    def bce_logits(x, y):
        # stable BCE-with-logits == BCELoss(sigmoid(x), y)
        return jnp.maximum(x, 0.0) - x * y + jnp.log(1.0 + jnp.exp(-jnp.abs(x)))

    bce_obj = bce_logits(p_obj, g_obj)

    cls_per_loc = bce_logits(slab_ref[ROW_PCLS], slab_ref[ROW_GCLS])
    for ci in range(1, NUM_CLASSES):
        cls_per_loc = cls_per_loc + bce_logits(slab_ref[ROW_PCLS + ci],
                                               slab_ref[ROW_GCLS + ci])

    # zero-padded lanes have g_obj == ignore == 0 -> every term is exactly 0
    xy_term = giou_loss * g_obj            # == wh term in the reference
    obj_term = g_obj * bce_obj
    noobj_term = (1.0 - g_obj) * bce_obj * ignore
    cls_term = g_obj * cls_per_loc

    def fold(x):
        # (TR, 128) -> (8, 128): pure vreg adds over whole tiles, no XLU.
        return jnp.sum(x.reshape(-1, 8, LANES), axis=0)

    # accumulate per-lane partials in the resident output block; the output
    # block index depends only on the parallel axis, so it stays in VMEM
    # across the whole reduction axis.
    out_ref[0] = out_ref[0] + fold(xy_term)
    out_ref[1] = out_ref[1] + fold(obj_term)
    out_ref[2] = out_ref[2] + fold(noobj_term)
    out_ref[3] = out_ref[3] + fold(cls_term)


def _fused_loss_sums(slab, tr, steps):
    """slab: (NUM_ROWS, NUM_CORES*steps*tr, 128) f32 -> (4,) loss sums."""
    out = pl.pallas_call(
        _loss_kernel,
        out_shape=jax.ShapeDtypeStruct((NUM_CORES * 4, 8, LANES), jnp.float32),
        grid_spec=pltpu.PrefetchScalarGridSpec(
            num_scalar_prefetch=0,
            grid=(NUM_CORES, steps),
            in_specs=[pl.BlockSpec((NUM_ROWS, tr, LANES),
                                   lambda c, k: (0, c * steps + k, 0))],
            out_specs=pl.BlockSpec((4, 8, LANES), lambda c, k: (c, 0, 0)),
        ),
        compiler_params=pltpu.CompilerParams(
            dimension_semantics=("parallel", "arbitrary")),
    )(slab)
    # tiny final reduce (2*4*8*128 floats) done by XLA in the wrapper
    return jnp.sum(out.reshape(NUM_CORES, 4, 8, LANES), axis=(0, 2, 3))


# ----------------------------------------------------------------------------
# Synthetic deterministic coder (glue, plain JAX)
# ----------------------------------------------------------------------------
def split_preds(pred, num_classes, num_anchors=NUM_ANCHORS):
    B, S, _, _ = pred.shape
    p = pred.reshape(B, S, S, num_anchors, 5 + num_classes)
    txty = jax.nn.sigmoid(p[..., 0:2])
    twth = p[..., 2:4]
    obj_logit = p[..., 4:5]      # raw logits: BCE-with-logits is done in-kernel
    cls_logit = p[..., 5:]
    return S, txty, twth, obj_logit, cls_logit


def decode(bbox, size, anchors):
    # bbox: (B, S, S, A, 4) = [prop_txty (in-cell offset), twth (log scale)]
    txty = bbox[..., 0:2]
    twth = bbox[..., 2:4]
    gy, gx = jnp.meshgrid(jnp.arange(size), jnp.arange(size), indexing="ij")
    grid = jnp.stack([gx, gy], axis=-1).astype(jnp.float32)      # (S, S, 2)
    cxcy = (txty + grid[None, :, :, None, :]) / float(size)
    wh = jnp.exp(twth) * anchors[None, None, None, :, :]
    return jnp.concatenate([cxcy, wh], axis=-1)


def cxcy_to_xy(b):
    cxcy, wh = b[..., 0:2], b[..., 2:4]
    return jnp.concatenate([cxcy - wh / 2.0, cxcy + wh / 2.0], axis=-1)


def build_target(gt_boxes, gt_labels, size, anchors, num_classes,
                 num_anchors=NUM_ANCHORS):
    B = gt_boxes.shape[0]
    x1, y1, x2, y2 = (gt_boxes[:, 0], gt_boxes[:, 1],
                      gt_boxes[:, 2], gt_boxes[:, 3])
    cx = (x1 + x2) / 2.0
    cy = (y1 + y2) / 2.0
    w = x2 - x1
    h = y2 - y1
    cell_x = jnp.clip(jnp.floor(cx * size), 0, size - 1).astype(jnp.int32)
    cell_y = jnp.clip(jnp.floor(cy * size), 0, size - 1).astype(jnp.int32)

    # best anchor per box by wh-IoU
    inter = (jnp.minimum(w[:, None], anchors[None, :, 0])
             * jnp.minimum(h[:, None], anchors[None, :, 1]))
    union = (w[:, None] * h[:, None]
             + anchors[None, :, 0] * anchors[None, :, 1] - inter)
    best_a = jnp.argmax(inter / union, axis=1)                    # (B,)

    ar = jnp.arange(size)
    cell_mask = ((ar[None, :] == cell_y[:, None])[:, :, None]
                 & (ar[None, :] == cell_x[:, None])[:, None, :])   # (B, S, S)
    a_mask = jnp.arange(num_anchors)[None, :] == best_a[:, None]   # (B, A)
    full = (cell_mask[:, :, :, None]
            & a_mask[:, None, None, :]).astype(jnp.float32)        # (B,S,S,A)
    gt_objectness = full[..., None]                                # (B,S,S,A,1)

    tx = cx * size - cell_x.astype(jnp.float32)
    ty = cy * size - cell_y.astype(jnp.float32)
    prop_txty_b = jnp.stack([tx, ty], axis=-1)                     # (B, 2)
    aw = anchors[best_a, 0]
    ah = anchors[best_a, 1]
    twth_b = jnp.stack([jnp.log(w / aw), jnp.log(h / ah)], axis=-1)

    gt_prop_txty = gt_objectness * prop_txty_b[:, None, None, None, :]
    gt_twth = gt_objectness * twth_b[:, None, None, None, :]
    cls_oh = jax.nn.one_hot(gt_labels, num_classes, dtype=jnp.float32)
    gt_classes = gt_objectness * cls_oh[:, None, None, None, :]
    # TODO(synk): real YOLOv4 coders zero the ignore mask where pred/gt IoU is
    # high; kept all-ones here (synthetic coder).
    ignore_mask = jnp.ones((B, size, size, num_anchors), jnp.float32)
    return gt_prop_txty, gt_twth, gt_objectness, gt_classes, ignore_mask


def _build_scale_slab(pred, scale, gt_boxes, gt_labels):
    """Build the (NUM_ROWS, N_scale) feature-major slab for one scale."""
    anchors = jnp.asarray(ANCHORS[scale], jnp.float32)

    size, p_txty, p_twth, p_obj, p_cls = split_preds(pred, NUM_CLASSES)
    pred_bbox = decode(jnp.concatenate([p_txty, p_twth], axis=-1), size, anchors)
    pred_xyxy = cxcy_to_xy(pred_bbox)

    (gt_prop_txty, gt_twth, gt_obj, gt_cls,
     ignore_mask) = build_target(gt_boxes, gt_labels, size, anchors, NUM_CLASSES)
    gt_bbox = decode(jnp.concatenate([gt_prop_txty, gt_twth], axis=-1),
                     size, anchors)
    gt_xyxy = cxcy_to_xy(gt_bbox)

    # one concatenate + one transpose per scale (feature-major output)
    feat = jnp.concatenate(
        [pred_xyxy, gt_xyxy, p_obj, gt_obj, ignore_mask[..., None],
         p_cls, gt_cls], axis=-1)                     # (B, S, S, A, NUM_ROWS)
    return feat.reshape(-1, NUM_ROWS).T               # (NUM_ROWS, N_scale)


# ----------------------------------------------------------------------------
# Full forward pass (matches YOLOv4_Loss.forward semantics)
# ----------------------------------------------------------------------------
@jax.jit
def yolov4_loss(pred_l, pred_m, pred_s, gt_boxes, gt_labels):
    batch_size = gt_labels.shape[0]

    # fuse the three scales along the lane axis (the sums are additive and
    # equally weighted across scales)
    slab = jnp.concatenate(
        [_build_scale_slab(p, s, gt_boxes, gt_labels)
         for p, s in ((pred_l, "l"), (pred_m, "m"), (pred_s, "s"))],
        axis=1)                                        # (NUM_ROWS, N)

    # size the tiles to the real N: nb 128-lane columns split across cores,
    # each core runs `steps` tiles of `tr` sublane rows (tr multiple of 8).
    n = slab.shape[1]
    nb = _cdiv(n, LANES)
    per_core = _cdiv(nb, NUM_CORES)
    steps = max(1, _cdiv(per_core, MAX_TILE_ROWS))
    tr = _round_up(_cdiv(per_core, steps), 8)
    nb_pad = NUM_CORES * steps * tr
    n_pad = nb_pad * LANES
    if n_pad != n:
        slab = jnp.pad(slab, ((0, 0), (0, n_pad - n)))   # padded lanes -> 0 loss
    slab = slab.reshape(NUM_ROWS, nb_pad, LANES)

    sums = _fused_loss_sums(slab, tr, steps)
    xy_sum, obj_sum, noobj_sum, cls_sum = sums[0], sums[1], sums[2], sums[3]

    # the reference assigns 5*... then overwrites with 2.5*... -> effective 2.5;
    # xy_loss and wh_loss are literally the same quantity in the reference.
    xy_loss = 2.5 * xy_sum / batch_size
    wh_loss = 2.5 * xy_sum / batch_size
    obj_loss = 1.0 * obj_sum / batch_size
    no_obj_loss = 0.5 * noobj_sum / batch_size
    cls_loss = 1.0 * cls_sum / batch_size
    total = xy_loss + wh_loss + obj_loss + no_obj_loss + cls_loss
    return total, (xy_loss, wh_loss, obj_loss, no_obj_loss, cls_loss)


if __name__ == "__main__":
    key = jax.random.PRNGKey(0)
    B = 2
    ch = NUM_ANCHORS * (5 + NUM_CLASSES)          # 3 * 9 = 27
    k1, k2, k3, k4, k5 = jax.random.split(key, 5)

    # small YOLO heads: large / medium / small feature maps (channel-last)
    pred_l = jax.random.normal(k1, (B, 4, 4, ch), jnp.float32)
    pred_m = jax.random.normal(k2, (B, 8, 8, ch), jnp.float32)
    pred_s = jax.random.normal(k3, (B, 16, 16, ch), jnp.float32)

    cxcy = jax.random.uniform(k4, (B, 2), minval=0.3, maxval=0.7)
    wh = jax.random.uniform(k5, (B, 2), minval=0.1, maxval=0.3)
    gt_boxes = jnp.concatenate([cxcy - wh / 2.0, cxcy + wh / 2.0], axis=-1)
    gt_labels = jnp.array([1, 3], jnp.int32)

    total, parts = yolov4_loss(pred_l, pred_m, pred_s, gt_boxes, gt_labels)
    jax.block_until_ready(total)
    assert jnp.isfinite(total)
    print("KERNEL_OK")
</pallas_src>

<mosaic_0001>
module attributes {stable_mosaic.version = 11 : i64} {
  func.func @_loss_kernel(%arg0: i32, %arg1: i32, %arg2: memref<19x8x128xf32, #tpu.memory_space<vmem>>, %arg3: memref<4x8x128xf32, #tpu.memory_space<vmem>>) attributes {dimension_semantics = [#tpu.dimension_semantics<parallel>, #tpu.dimension_semantics<arbitrary>], iteration_bounds = array<i64: 2, 1>, scalar_prefetch = 0 : i64, scratch_operands = 0 : i64, tpu.core_type = #tpu.core_type<tc>, window_params = [{transform_indices = @transform_0, window_bounds = array<i64: 19, 8, 128>}, {transform_indices = @transform_1, window_bounds = array<i64: 4, 8, 128>}]} {
    %c0_i32 = arith.constant 0 : i32
    %0 = arith.cmpi eq, %arg1, %c0_i32 : i32
    %1 = arith.extui %0 : i1 to i32
    %c0_i32_0 = arith.constant 0 : i32
    %2 = arith.cmpi ne, %1, %c0_i32_0 : i32
    scf.if %2 {
      %cst_89 = arith.constant 0.000000e+00 : f32
      %185 = vector.broadcast %cst_89 : f32 to vector<4x8x128xf32>
      %c0_90 = arith.constant 0 : index
      %c0_91 = arith.constant 0 : index
      %c0_92 = arith.constant 0 : index
      %186 = vector.load %arg3[%c0_90, %c0_91, %c0_92] : memref<4x8x128xf32, #tpu.memory_space<vmem>>, vector<4x8x128xf32>
      tpu.vector_store %arg3[%c0_90, %c0_91, %c0_92], %185 {strides = array<i32>} : memref<4x8x128xf32, #tpu.memory_space<vmem>>, vector<4x8x128xf32>,
    } else {
    }
    %c0 = arith.constant 0 : index
    %c0_1 = arith.constant 0 : index
    %c0_2 = arith.constant 0 : index
    %3 = vector.load %arg2[%c0, %c0_1, %c0_2] : memref<19x8x128xf32, #tpu.memory_space<vmem>>, vector<1x8x128xf32>
    %4 = vector.shape_cast %3 : vector<1x8x128xf32> to vector<8x128xf32>
    %c1 = arith.constant 1 : index
    %c0_3 = arith.constant 0 : index
    %c0_4 = arith.constant 0 : index
    %5 = vector.load %arg2[%c1, %c0_3, %c0_4] : memref<19x8x128xf32, #tpu.memory_space<vmem>>, vector<1x8x128xf32>
    %6 = vector.shape_cast %5 : vector<1x8x128xf32> to vector<8x128xf32>
    %c2 = arith.constant 2 : index
    %c0_5 = arith.constant 0 : index
    %c0_6 = arith.constant 0 : index
    %7 = vector.load %arg2[%c2, %c0_5, %c0_6] : memref<19x8x128xf32, #tpu.memory_space<vmem>>, vector<1x8x128xf32>
    %8 = vector.shape_cast %7 : vector<1x8x128xf32> to vector<8x128xf32>
    %c3 = arith.constant 3 : index
    %c0_7 = arith.constant 0 : index
    %c0_8 = arith.constant 0 : index
    %9 = vector.load %arg2[%c3, %c0_7, %c0_8] : memref<19x8x128xf32, #tpu.memory_space<vmem>>, vector<1x8x128xf32>
    %10 = vector.shape_cast %9 : vector<1x8x128xf32> to vector<8x128xf32>
    %c4 = arith.constant 4 : index
    %c0_9 = arith.constant 0 : index
    %c0_10 = arith.constant 0 : index
    %11 = vector.load %arg2[%c4, %c0_9, %c0_10] : memref<19x8x128xf32, #tpu.memory_space<vmem>>, vector<1x8x128xf32>
    %12 = vector.shape_cast %11 : vector<1x8x128xf32> to vector<8x128xf32>
    %c5 = arith.constant 5 : index
    %c0_11 = arith.constant 0 : index
    %c0_12 = arith.constant 0 : index
    %13 = vector.load %arg2[%c5, %c0_11, %c0_12] : memref<19x8x128xf32, #tpu.memory_space<vmem>>, vector<1x8x128xf32>
    %14 = vector.shape_cast %13 : vector<1x8x128xf32> to vector<8x128xf32>
    %c6 = arith.constant 6 : index
    %c0_13 = arith.constant 0 : index
    %c0_14 = arith.constant 0 : index
    %15 = vector.load %arg2[%c6, %c0_13, %c0_14] : memref<19x8x128xf32, #tpu.memory_space<vmem>>, vector<1x8x128xf32>
    %16 = vector.shape_cast %15 : vector<1x8x128xf32> to vector<8x128xf32>
    %c7 = arith.constant 7 : index
    %c0_15 = arith.constant 0 : index
    %c0_16 = arith.constant 0 : index
    %17 = vector.load %arg2[%c7, %c0_15, %c0_16] : memref<19x8x128xf32, #tpu.memory_space<vmem>>, vector<1x8x128xf32>
    %18 = vector.shape_cast %17 : vector<1x8x128xf32> to vector<8x128xf32>
    %c8 = arith.constant 8 : index
    %c0_17 = arith.constant 0 : index
    %c0_18 = arith.constant 0 : index
    %19 = vector.load %arg2[%c8, %c0_17, %c0_18] : memref<19x8x128xf32, #tpu.memory_space<vmem>>, vector<1x8x128xf32>
    %20 = vector.shape_cast %19 : vector<1x8x128xf32> to vector<8x128xf32>
    %c9 = arith.constant 9 : index
    %c0_19 = arith.constant 0 : index
    %c0_20 = arith.constant 0 : index
    %21 = vector.load %arg2[%c9, %c0_19, %c0_20] : memref<19x8x128xf32, #tpu.memory_space<vmem>>, vector<1x8x128xf32>
    %22 = vector.shape_cast %21 : vector<1x8x128xf32> to vector<8x128xf32>
    %c10 = arith.constant 10 : index
    %c0_21 = arith.constant 0 : index
    %c0_22 = arith.constant 0 : index
    %23 = vector.load %arg2[%c10, %c0_21, %c0_22] : memref<19x8x128xf32, #tpu.memory_space<vmem>>, vector<1x8x128xf32>
    %24 = vector.shape_cast %23 : vector<1x8x128xf32> to vector<8x128xf32>
    %25 = arith.subf %8, %4 : vector<8x128xf32>
    %26 = arith.subf %10, %6 : vector<8x128xf32>
    %27 = arith.mulf %25, %26 : vector<8x128xf32>
    %28 = arith.subf %16, %12 : vector<8x128xf32>
    %29 = arith.subf %18, %14 : vector<8x128xf32>
    %30 = arith.mulf %28, %29 : vector<8x128xf32>
    %31 = arith.minimumf %16, %8 : vector<8x128xf32>
    %32 = arith.maximumf %12, %4 : vector<8x128xf32>
    %33 = arith.subf %31, %32 : vector<8x128xf32>
    %cst = arith.constant 0.000000e+00 : f32
    %34 = vector.broadcast %cst : f32 to vector<8x128xf32>
    %35 = arith.maximumf %33, %34 : vector<8x128xf32>
    %36 = arith.minimumf %18, %10 : vector<8x128xf32>
    %37 = arith.maximumf %14, %6 : vector<8x128xf32>
    %38 = arith.subf %36, %37 : vector<8x128xf32>
    %cst_23 = arith.constant 0.000000e+00 : f32
    %39 = vector.broadcast %cst_23 : f32 to vector<8x128xf32>
    %40 = arith.maximumf %38, %39 : vector<8x128xf32>
    %41 = arith.mulf %35, %40 : vector<8x128xf32>
    %42 = arith.addf %30, %27 : vector<8x128xf32>
    %43 = arith.subf %42, %41 : vector<8x128xf32>
    %44 = arith.maximumf %16, %8 : vector<8x128xf32>
    %45 = arith.minimumf %12, %4 : vector<8x128xf32>
    %46 = arith.subf %44, %45 : vector<8x128xf32>
    %cst_24 = arith.constant 0.000000e+00 : f32
    %47 = vector.broadcast %cst_24 : f32 to vector<8x128xf32>
    %48 = arith.maximumf %46, %47 : vector<8x128xf32>
    %49 = arith.maximumf %18, %10 : vector<8x128xf32>
    %50 = arith.minimumf %14, %6 : vector<8x128xf32>
    %51 = arith.subf %49, %50 : vector<8x128xf32>
    %cst_25 = arith.constant 0.000000e+00 : f32
    %52 = vector.broadcast %cst_25 : f32 to vector<8x128xf32>
    %53 = arith.maximumf %51, %52 : vector<8x128xf32>
    %54 = arith.mulf %48, %53 : vector<8x128xf32>
    %cst_26 = arith.constant 9.99999996E-13 : f32
    %55 = vector.broadcast %cst_26 : f32 to vector<8x128xf32>
    %56 = arith.maximumf %43, %55 : vector<8x128xf32>
    %57 = tpu.reciprocal %56 {approx = true} : vector<8x128xf32> -> vector<8x128xf32>
    %cst_27 = arith.constant 9.99999996E-13 : f32
    %58 = vector.broadcast %cst_27 : f32 to vector<8x128xf32>
    %59 = arith.maximumf %54, %58 : vector<8x128xf32>
    %60 = tpu.reciprocal %59 {approx = true} : vector<8x128xf32> -> vector<8x128xf32>
    %61 = arith.mulf %41, %57 : vector<8x128xf32>
    %62 = arith.subf %54, %43 : vector<8x128xf32>
    %63 = arith.mulf %62, %60 : vector<8x128xf32>
    %64 = arith.subf %61, %63 : vector<8x128xf32>
    %cst_28 = arith.constant 1.000000e+00 : f32
    %65 = vector.broadcast %cst_28 : f32 to vector<8x128xf32>
    %66 = arith.subf %65, %64 : vector<8x128xf32>
    %cst_29 = arith.constant 0.000000e+00 : f32
    %67 = vector.broadcast %cst_29 : f32 to vector<8x128xf32>
    %68 = arith.maximumf %20, %67 : vector<8x128xf32>
    %69 = arith.mulf %20, %22 : vector<8x128xf32>
    %70 = arith.subf %68, %69 : vector<8x128xf32>
    %71 = math.absf %20 : vector<8x128xf32>
    %cst_30 = arith.constant 0.000000e+00 : f32
    %72 = vector.broadcast %cst_30 : f32 to vector<8x128xf32>
    %73 = arith.subf %72, %71 : vector<8x128xf32>
    %74 = math.exp %73 : vector<8x128xf32>
    %cst_31 = arith.constant 1.000000e+00 : f32
    %75 = vector.broadcast %cst_31 : f32 to vector<8x128xf32>
    %76 = arith.addf %75, %74 : vector<8x128xf32>
    %77 = math.log %76 : vector<8x128xf32>
    %78 = arith.addf %70, %77 : vector<8x128xf32>
    %c11 = arith.constant 11 : index
    %c0_32 = arith.constant 0 : index
    %c0_33 = arith.constant 0 : index
    %79 = vector.load %arg2[%c11, %c0_32, %c0_33] : memref<19x8x128xf32, #tpu.memory_space<vmem>>, vector<1x8x128xf32>
    %80 = vector.shape_cast %79 : vector<1x8x128xf32> to vector<8x128xf32>
    %c15 = arith.constant 15 : index
    %c0_34 = arith.constant 0 : index
    %c0_35 = arith.constant 0 : index
    %81 = vector.load %arg2[%c15, %c0_34, %c0_35] : memref<19x8x128xf32, #tpu.memory_space<vmem>>, vector<1x8x128xf32>
    %82 = vector.shape_cast %81 : vector<1x8x128xf32> to vector<8x128xf32>
    %cst_36 = arith.constant 0.000000e+00 : f32
    %83 = vector.broadcast %cst_36 : f32 to vector<8x128xf32>
    %84 = arith.maximumf %80, %83 : vector<8x128xf32>
    %85 = arith.mulf %80, %82 : vector<8x128xf32>
    %86 = arith.subf %84, %85 : vector<8x128xf32>
    %87 = math.absf %80 : vector<8x128xf32>
    %cst_37 = arith.constant 0.000000e+00 : f32
    %88 = vector.broadcast %cst_37 : f32 to vector<8x128xf32>
    %89 = arith.subf %88, %87 : vector<8x128xf32>
    %90 = math.exp %89 : vector<8x128xf32>
    %cst_38 = arith.constant 1.000000e+00 : f32
    %91 = vector.broadcast %cst_38 : f32 to vector<8x128xf32>
    %92 = arith.addf %91, %90 : vector<8x128xf32>
    %93 = math.log %92 : vector<8x128xf32>
    %94 = arith.addf %86, %93 : vector<8x128xf32>
    %c12 = arith.constant 12 : index
    %c0_39 = arith.constant 0 : index
    %c0_40 = arith.constant 0 : index
    %95 = vector.load %arg2[%c12, %c0_39, %c0_40] : memref<19x8x128xf32, #tpu.memory_space<vmem>>, vector<1x8x128xf32>
    %96 = vector.shape_cast %95 : vector<1x8x128xf32> to vector<8x128xf32>
    %c16 = arith.constant 16 : index
    %c0_41 = arith.constant 0 : index
    %c0_42 = arith.constant 0 : index
    %97 = vector.load %arg2[%c16, %c0_41, %c0_42] : memref<19x8x128xf32, #tpu.memory_space<vmem>>, vector<1x8x128xf32>
    %98 = vector.shape_cast %97 : vector<1x8x128xf32> to vector<8x128xf32>
    %cst_43 = arith.constant 0.000000e+00 : f32
    %99 = vector.broadcast %cst_43 : f32 to vector<8x128xf32>
    %100 = arith.maximumf %96, %99 : vector<8x128xf32>
    %101 = arith.mulf %96, %98 : vector<8x128xf32>
    %102 = arith.subf %100, %101 : vector<8x128xf32>
    %103 = math.absf %96 : vector<8x128xf32>
    %cst_44 = arith.constant 0.000000e+00 : f32
    %104 = vector.broadcast %cst_44 : f32 to vector<8x128xf32>
    %105 = arith.subf %104, %103 : vector<8x128xf32>
    %106 = math.exp %105 : vector<8x128xf32>
    %cst_45 = arith.constant 1.000000e+00 : f32
    %107 = vector.broadcast %cst_45 : f32 to vector<8x128xf32>
    %108 = arith.addf %107, %106 : vector<8x128xf32>
    %109 = math.log %108 : vector<8x128xf32>
    %110 = arith.addf %102, %109 : vector<8x128xf32>
    %111 = arith.addf %94, %110 : vector<8x128xf32>
    %c13 = arith.constant 13 : index
    %c0_46 = arith.constant 0 : index
    %c0_47 = arith.constant 0 : index
    %112 = vector.load %arg2[%c13, %c0_46, %c0_47] : memref<19x8x128xf32, #tpu.memory_space<vmem>>, vector<1x8x128xf32>
    %113 = vector.shape_cast %112 : vector<1x8x128xf32> to vector<8x128xf32>
    %c17 = arith.constant 17 : index
    %c0_48 = arith.constant 0 : index
    %c0_49 = arith.constant 0 : index
    %114 = vector.load %arg2[%c17, %c0_48, %c0_49] : memref<19x8x128xf32, #tpu.memory_space<vmem>>, vector<1x8x128xf32>
    %115 = vector.shape_cast %114 : vector<1x8x128xf32> to vector<8x128xf32>
    %cst_50 = arith.constant 0.000000e+00 : f32
    %116 = vector.broadcast %cst_50 : f32 to vector<8x128xf32>
    %117 = arith.maximumf %113, %116 : vector<8x128xf32>
    %118 = arith.mulf %113, %115 : vector<8x128xf32>
    %119 = arith.subf %117, %118 : vector<8x128xf32>
    %120 = math.absf %113 : vector<8x128xf32>
    %cst_51 = arith.constant 0.000000e+00 : f32
    %121 = vector.broadcast %cst_51 : f32 to vector<8x128xf32>
    %122 = arith.subf %121, %120 : vector<8x128xf32>
    %123 = math.exp %122 : vector<8x128xf32>
    %cst_52 = arith.constant 1.000000e+00 : f32
    %124 = vector.broadcast %cst_52 : f32 to vector<8x128xf32>
    %125 = arith.addf %124, %123 : vector<8x128xf32>
    %126 = math.log %125 : vector<8x128xf32>
    %127 = arith.addf %119, %126 : vector<8x128xf32>
    %128 = arith.addf %111, %127 : vector<8x128xf32>
    %c14 = arith.constant 14 : index
    %c0_53 = arith.constant 0 : index
    %c0_54 = arith.constant 0 : index
    %129 = vector.load %arg2[%c14, %c0_53, %c0_54] : memref<19x8x128xf32, #tpu.memory_space<vmem>>, vector<1x8x128xf32>
    %130 = vector.shape_cast %129 : vector<1x8x128xf32> to vector<8x128xf32>
    %c18 = arith.constant 18 : index
    %c0_55 = arith.constant 0 : index
    %c0_56 = arith.constant 0 : index
    %131 = vector.load %arg2[%c18, %c0_55, %c0_56] : memref<19x8x128xf32, #tpu.memory_space<vmem>>, vector<1x8x128xf32>
    %132 = vector.shape_cast %131 : vector<1x8x128xf32> to vector<8x128xf32>
    %cst_57 = arith.constant 0.000000e+00 : f32
    %133 = vector.broadcast %cst_57 : f32 to vector<8x128xf32>
    %134 = arith.maximumf %130, %133 : vector<8x128xf32>
    %135 = arith.mulf %130, %132 : vector<8x128xf32>
    %136 = arith.subf %134, %135 : vector<8x128xf32>
    %137 = math.absf %130 : vector<8x128xf32>
    %cst_58 = arith.constant 0.000000e+00 : f32
    %138 = vector.broadcast %cst_58 : f32 to vector<8x128xf32>
    %139 = arith.subf %138, %137 : vector<8x128xf32>
    %140 = math.exp %139 : vector<8x128xf32>
    %cst_59 = arith.constant 1.000000e+00 : f32
    %141 = vector.broadcast %cst_59 : f32 to vector<8x128xf32>
    %142 = arith.addf %141, %140 : vector<8x128xf32>
    %143 = math.log %142 : vector<8x128xf32>
    %144 = arith.addf %136, %143 : vector<8x128xf32>
    %145 = arith.addf %128, %144 : vector<8x128xf32>
    %146 = arith.mulf %66, %22 : vector<8x128xf32>
    %147 = arith.mulf %22, %78 : vector<8x128xf32>
    %cst_60 = arith.constant 1.000000e+00 : f32
    %148 = vector.broadcast %cst_60 : f32 to vector<8x128xf32>
    %149 = arith.subf %148, %22 : vector<8x128xf32>
    %150 = arith.mulf %149, %78 : vector<8x128xf32>
    %151 = arith.mulf %150, %24 : vector<8x128xf32>
    %152 = arith.mulf %22, %145 : vector<8x128xf32>
    %c0_61 = arith.constant 0 : index
    %c0_62 = arith.constant 0 : index
    %c0_63 = arith.constant 0 : index
    %153 = vector.load %arg3[%c0_61, %c0_62, %c0_63] : memref<4x8x128xf32, #tpu.memory_space<vmem>>, vector<1x8x128xf32>
    %154 = vector.shape_cast %153 : vector<1x8x128xf32> to vector<8x128xf32>
    %155 = vector.shape_cast %146 : vector<8x128xf32> to vector<1x8x128xf32>
    %cst_64 = arith.constant dense<0.000000e+00> : vector<8x128xf32>
    %156 = vector.multi_reduction <add>, %155, %cst_64 [0] : vector<1x8x128xf32> to vector<8x128xf32>
    %157 = arith.addf %154, %156 : vector<8x128xf32>
    %c0_65 = arith.constant 0 : index
    %c0_66 = arith.constant 0 : index
    %c0_67 = arith.constant 0 : index
    %158 = vector.load %arg3[%c0_65, %c0_66, %c0_67] : memref<4x8x128xf32, #tpu.memory_space<vmem>>, vector<1x8x128xf32>
    %159 = vector.shape_cast %158 : vector<1x8x128xf32> to vector<8x128xf32>
    %160 = vector.shape_cast %157 : vector<8x128xf32> to vector<1x8x128xf32>
    tpu.vector_store %arg3[%c0_65, %c0_66, %c0_67], %160 {strides = array<i32>} : memref<4x8x128xf32, #tpu.memory_space<vmem>>, vector<1x8x128xf32>,
    %c1_68 = arith.constant 1 : index
    %c0_69 = arith.constant 0 : index
    %c0_70 = arith.constant 0 : index
    %161 = vector.load %arg3[%c1_68, %c0_69, %c0_70] : memref<4x8x128xf32, #tpu.memory_space<vmem>>, vector<1x8x128xf32>
    %162 = vector.shape_cast %161 : vector<1x8x128xf32> to vector<8x128xf32>
    %163 = vector.shape_cast %147 : vector<8x128xf32> to vector<1x8x128xf32>
    %cst_71 = arith.constant dense<0.000000e+00> : vector<8x128xf32>
    %164 = vector.multi_reduction <add>, %163, %cst_71 [0] : vector<1x8x128xf32> to vector<8x128xf32>
    %165 = arith.addf %162, %164 : vector<8x128xf32>
    %c1_72 = arith.constant 1 : index
    %c0_73 = arith.constant 0 : index
    %c0_74 = arith.constant 0 : index
    %166 = vector.load %arg3[%c1_72, %c0_73, %c0_74] : memref<4x8x128xf32, #tpu.memory_space<vmem>>, vector<1x8x128xf32>
    %167 = vector.shape_cast %166 : vector<1x8x128xf32> to vector<8x128xf32>
    %168 = vector.shape_cast %165 : vector<8x128xf32> to vector<1x8x128xf32>
    tpu.vector_store %arg3[%c1_72, %c0_73, %c0_74], %168 {strides = array<i32>} : memref<4x8x128xf32, #tpu.memory_space<vmem>>, vector<1x8x128xf32>,
    %c2_75 = arith.constant 2 : index
    %c0_76 = arith.constant 0 : index
    %c0_77 = arith.constant 0 : index
    %169 = vector.load %arg3[%c2_75, %c0_76, %c0_77] : memref<4x8x128xf32, #tpu.memory_space<vmem>>, vector<1x8x128xf32>
    %170 = vector.shape_cast %169 : vector<1x8x128xf32> to vector<8x128xf32>
    %171 = vector.shape_cast %151 : vector<8x128xf32> to vector<1x8x128xf32>
    %cst_78 = arith.constant dense<0.000000e+00> : vector<8x128xf32>
    %172 = vector.multi_reduction <add>, %171, %cst_78 [0] : vector<1x8x128xf32> to vector<8x128xf32>
    %173 = arith.addf %170, %172 : vector<8x128xf32>
    %c2_79 = arith.constant 2 : index
    %c0_80 = arith.constant 0 : index
    %c0_81 = arith.constant 0 : index
    %174 = vector.load %arg3[%c2_79, %c0_80, %c0_81] : memref<4x8x128xf32, #tpu.memory_space<vmem>>, vector<1x8x128xf32>
    %175 = vector.shape_cast %174 : vector<1x8x128xf32> to vector<8x128xf32>
    %176 = vector.shape_cast %173 : vector<8x128xf32> to vector<1x8x128xf32>
    tpu.vector_store %arg3[%c2_79, %c0_80, %c0_81], %176 {strides = array<i32>} : memref<4x8x128xf32, #tpu.memory_space<vmem>>, vector<1x8x128xf32>,
    %c3_82 = arith.constant 3 : index
    %c0_83 = arith.constant 0 : index
    %c0_84 = arith.constant 0 : index
    %177 = vector.load %arg3[%c3_82, %c0_83, %c0_84] : memref<4x8x128xf32, #tpu.memory_space<vmem>>, vector<1x8x128xf32>
    %178 = vector.shape_cast %177 : vector<1x8x128xf32> to vector<8x128xf32>
    %179 = vector.shape_cast %152 : vector<8x128xf32> to vector<1x8x128xf32>
    %cst_85 = arith.constant dense<0.000000e+00> : vector<8x128xf32>
    %180 = vector.multi_reduction <add>, %179, %cst_85 [0] : vector<1x8x128xf32> to vector<8x128xf32>
    %181 = arith.addf %178, %180 : vector<8x128xf32>
    %c3_86 = arith.constant 3 : index
    %c0_87 = arith.constant 0 : index
    %c0_88 = arith.constant 0 : index
    %182 = vector.load %arg3[%c3_86, %c0_87, %c0_88] : memref<4x8x128xf32, #tpu.memory_space<vmem>>, vector<1x8x128xf32>
    %183 = vector.shape_cast %182 : vector<1x8x128xf32> to vector<8x128xf32>
    %184 = vector.shape_cast %181 : vector<8x128xf32> to vector<1x8x128xf32>
    tpu.vector_store %arg3[%c3_86, %c0_87, %c0_88], %184 {strides = array<i32>} : memref<4x8x128xf32, #tpu.memory_space<vmem>>, vector<1x8x128xf32>,
    return
  }
  func.func @transform_0(%arg0: i32, %arg1: i32) -> (i32, i32, i32) {
    %c1_i32 = arith.constant 1 : i32
    %0 = arith.muli %arg0, %c1_i32 : i32
    %1 = arith.addi %0, %arg1 : i32
    %c0_i32 = arith.constant 0 : i32
    %c0_i32_0 = arith.constant 0 : i32
    %c0_i32_1 = arith.constant 0 : i32
    return %c0_i32, %1, %c0_i32_0 : i32, i32, i32
  }
  func.func @transform_1(%arg0: i32, %arg1: i32) -> (i32, i32, i32) {
    %c0_i32 = arith.constant 0 : i32
    %c0_i32_0 = arith.constant 0 : i32
    %c0_i32_1 = arith.constant 0 : i32
    return %arg0, %c0_i32, %c0_i32_0 : i32, i32, i32
  }
}

</mosaic_0001>

<bundles_post_ra>
// kernel: mul.110.clone
= control target key start
LH: loop header
LB: loop body
LE: loop exit
PB: predicated region body
PF: predicated region fallthrough
CT: control target
= control target key end

     0   :  { %s118_s0 = inlined_call_operand.vmem [shape: f32[3,2], index: 0, kind: input, shape index: {}]   ;;  %s119_s1 = inlined_call_operand.vmem [shape: f32[2,4,4,3,2], index: 1, kind: output, shape index: {}]  }
   0x1   :  { %v4_v0 = vld [vmem:[%s118_s0] ss:$0 sm:$0xff]  ;;  %v38_v1 = vld [vmem:[%s118_s0 + $0x1] ss:$0 sm:$0xff] }
   0x2   :  { %5 = vst [vmem:[%s119_s1] sm:$0xf] %v4_v0  ;;  %39 = vst [vmem:[%s119_s1 + $0x20] sm:$0xf] %v38_v1 }
   0x3   :  { %40 = vst [vmem:[%s119_s1 + $0x10] sm:$0xf] %v4_v0  ;;  %41 = vst [vmem:[%s119_s1 + $0x30] sm:$0xf] %v38_v1 }
   0x4   :  { %42 = vst [vmem:[%s119_s1 + $0x4] sm:$0xf] %v4_v0  ;;  %43 = vst [vmem:[%s119_s1 + $0x24] sm:$0xf] %v38_v1 }
   0x5   :  { %44 = vst [vmem:[%s119_s1 + $0x14] sm:$0xf] %v4_v0  ;;  %45 = vst [vmem:[%s119_s1 + $0x34] sm:$0xf] %v38_v1 }
   0x6   :  { %46 = vst [vmem:[%s119_s1 + $0x8] sm:$0xf] %v4_v0  ;;  %47 = vst [vmem:[%s119_s1 + $0x28] sm:$0xf] %v38_v1 }
   0x7   :  { %48 = vst [vmem:[%s119_s1 + $0x18] sm:$0xf] %v4_v0  ;;  %49 = vst [vmem:[%s119_s1 + $0x38] sm:$0xf] %v38_v1 }
   0x8   :  { %50 = vst [vmem:[%s119_s1 + $0xc] sm:$0xf] %v4_v0  ;;  %51 = vst [vmem:[%s119_s1 + $0x2c] sm:$0xf] %v38_v1 }
   0x9   :  { %52 = vst [vmem:[%s119_s1 + $0x1c] sm:$0xf] %v4_v0  ;;  %53 = vst [vmem:[%s119_s1 + $0x3c] sm:$0xf] %v38_v1 }

// kernel: mul.145.clone
= control target key start
LH: loop header
LB: loop body
LE: loop exit
PB: predicated region body
PF: predicated region fallthrough
CT: control target
= control target key end

     0   :  { %s214_s0 = inlined_call_operand.vmem [shape: f32[3,2], index: 0, kind: input, shape index: {}]   ;;  %s215_s1 = inlined_call_operand.vmem [shape: f32[2,8,8,3,2], index: 1, kind: output, shape index: {}]  }
   0x1   :  { %v4_v0 = vld [vmem:[%s214_s0] ss:$0 sm:$0xff]  ;;  %v70_v1 = vld [vmem:[%s214_s0 + $0x1] ss:$0 sm:$0xff] }
   0x2   :  { %5 = vst [vmem:[%s215_s1] sm:$0xff] %v4_v0  ;;  %71 = vst [vmem:[%s215_s1 + $0x80] sm:$0xff] %v70_v1 }
   0x3   :  { %72 = vst [vmem:[%s215_s1 + $0x40] sm:$0xff] %v4_v0  ;;  %73 = vst [vmem:[%s215_s1 + $0xc0] sm:$0xff] %v70_v1 }
   0x4   :  { %74 = vst [vmem:[%s215_s1 + $0x8] sm:$0xff] %v4_v0  ;;  %75 = vst [vmem:[%s215_s1 + $0x88] sm:$0xff] %v70_v1 }
   0x5   :  { %76 = vst [vmem:[%s215_s1 + $0x48] sm:$0xff] %v4_v0  ;;  %77 = vst [vmem:[%s215_s1 + $0xc8] sm:$0xff] %v70_v1 }
   0x6   :  { %78 = vst [vmem:[%s215_s1 + $0x10] sm:$0xff] %v4_v0  ;;  %79 = vst [vmem:[%s215_s1 + $0x90] sm:$0xff] %v70_v1 }
   0x7   :  { %80 = vst [vmem:[%s215_s1 + $0x50] sm:$0xff] %v4_v0  ;;  %81 = vst [vmem:[%s215_s1 + $0xd0] sm:$0xff] %v70_v1 }
   0x8   :  { %82 = vst [vmem:[%s215_s1 + $0x18] sm:$0xff] %v4_v0  ;;  %83 = vst [vmem:[%s215_s1 + $0x98] sm:$0xff] %v70_v1 }
   0x9   :  { %84 = vst [vmem:[%s215_s1 + $0x58] sm:$0xff] %v4_v0  ;;  %85 = vst [vmem:[%s215_s1 + $0xd8] sm:$0xff] %v70_v1 }
   0xa   :  { %86 = vst [vmem:[%s215_s1 + $0x20] sm:$0xff] %v4_v0  ;;  %87 = vst [vmem:[%s215_s1 + $0xa0] sm:$0xff] %v70_v1 }
   0xb   :  { %88 = vst [vmem:[%s215_s1 + $0x60] sm:$0xff] %v4_v0  ;;  %89 = vst [vmem:[%s215_s1 + $0xe0] sm:$0xff] %v70_v1 }
   0xc   :  { %90 = vst [vmem:[%s215_s1 + $0x28] sm:$0xff] %v4_v0  ;;  %91 = vst [vmem:[%s215_s1 + $0xa8] sm:$0xff] %v70_v1 }
   0xd   :  { %92 = vst [vmem:[%s215_s1 + $0x68] sm:$0xff] %v4_v0  ;;  %93 = vst [vmem:[%s215_s1 + $0xe8] sm:$0xff] %v70_v1 }
   0xe   :  { %94 = vst [vmem:[%s215_s1 + $0x30] sm:$0xff] %v4_v0  ;;  %95 = vst [vmem:[%s215_s1 + $0xb0] sm:$0xff] %v70_v1 }
   0xf   :  { %96 = vst [vmem:[%s215_s1 + $0x70] sm:$0xff] %v4_v0  ;;  %97 = vst [vmem:[%s215_s1 + $0xf0] sm:$0xff] %v70_v1 }
  0x10   :  { %98 = vst [vmem:[%s215_s1 + $0x38] sm:$0xff] %v4_v0  ;;  %99 = vst [vmem:[%s215_s1 + $0xb8] sm:$0xff] %v70_v1 }
  0x11   :  { %100 = vst [vmem:[%s215_s1 + $0x78] sm:$0xff] %v4_v0  ;;  %101 = vst [vmem:[%s215_s1 + $0xf8] sm:$0xff] %v70_v1 }

// kernel: mul.180.clone
= control target key start
LH: loop header
LB: loop body
LE: loop exit
PB: predicated region body
PF: predicated region fallthrough
CT: control target
= control target key end

     0   :  { %s922_s0 = inlined_call_operand.vmem [shape: f32[3,2], index: 0, kind: input, shape index: {}]   ;;  %s923_s1 = inlined_call_operand.vmem [shape: f32[2,16,16,3,2], index: 1, kind: output, shape index: {}]  }
   0x1   :  { %v403_v0 = vld [vmem:[%s922_s0] ss:$0 sm:$0xff]  ;;  %v408_v1 = vld [vmem:[%s922_s0 + $0x1] ss:$0 sm:$0xff] }
   0x2   :  { %5 = vst [vmem:[%s923_s1] sm:$0xff] %v403_v0  ;;  %263 = vst [vmem:[%s923_s1 + $0x200] sm:$0xff] %v408_v1 }
   0x3   :  { %264 = vst [vmem:[%s923_s1 + $0x100] sm:$0xff] %v403_v0  ;;  %265 = vst [vmem:[%s923_s1 + $0x300] sm:$0xff] %v408_v1 }
   0x4   :  { %266 = vst [vmem:[%s923_s1 + $0x10] sm:$0xff] %v403_v0  ;;  %267 = vst [vmem:[%s923_s1 + $0x210] sm:$0xff] %v408_v1 }
   0x5   :  { %268 = vst [vmem:[%s923_s1 + $0x110] sm:$0xff] %v403_v0  ;;  %269 = vst [vmem:[%s923_s1 + $0x310] sm:$0xff] %v408_v1 }
   0x6   :  { %270 = vst [vmem:[%s923_s1 + $0x20] sm:$0xff] %v403_v0  ;;  %271 = vst [vmem:[%s923_s1 + $0x220] sm:$0xff] %v408_v1 }
   0x7   :  { %272 = vst [vmem:[%s923_s1 + $0x120] sm:$0xff] %v403_v0  ;;  %273 = vst [vmem:[%s923_s1 + $0x320] sm:$0xff] %v408_v1 }
   0x8   :  { %274 = vst [vmem:[%s923_s1 + $0x30] sm:$0xff] %v403_v0  ;;  %275 = vst [vmem:[%s923_s1 + $0x230] sm:$0xff] %v408_v1 }
   0x9   :  { %276 = vst [vmem:[%s923_s1 + $0x130] sm:$0xff] %v403_v0  ;;  %277 = vst [vmem:[%s923_s1 + $0x330] sm:$0xff] %v408_v1 }
   0xa   :  { %278 = vst [vmem:[%s923_s1 + $0x40] sm:$0xff] %v403_v0  ;;  %279 = vst [vmem:[%s923_s1 + $0x240] sm:$0xff] %v408_v1 }
   0xb   :  { %280 = vst [vmem:[%s923_s1 + $0x140] sm:$0xff] %v403_v0  ;;  %281 = vst [vmem:[%s923_s1 + $0x340] sm:$0xff] %v408_v1 }
   0xc   :  { %282 = vst [vmem:[%s923_s1 + $0x50] sm:$0xff] %v403_v0  ;;  %283 = vst [vmem:[%s923_s1 + $0x250] sm:$0xff] %v408_v1 }
   0xd   :  { %284 = vst [vmem:[%s923_s1 + $0x150] sm:$0xff] %v403_v0  ;;  %285 = vst [vmem:[%s923_s1 + $0x350] sm:$0xff] %v408_v1 }
   0xe   :  { %286 = vst [vmem:[%s923_s1 + $0x60] sm:$0xff] %v403_v0  ;;  %287 = vst [vmem:[%s923_s1 + $0x260] sm:$0xff] %v408_v1 }
   0xf   :  { %288 = vst [vmem:[%s923_s1 + $0x160] sm:$0xff] %v403_v0  ;;  %289 = vst [vmem:[%s923_s1 + $0x360] sm:$0xff] %v408_v1 }
  0x10   :  { %290 = vst [vmem:[%s923_s1 + $0x70] sm:$0xff] %v403_v0  ;;  %291 = vst [vmem:[%s923_s1 + $0x270] sm:$0xff] %v408_v1 }
  0x11   :  { %292 = vst [vmem:[%s923_s1 + $0x170] sm:$0xff] %v403_v0  ;;  %293 = vst [vmem:[%s923_s1 + $0x370] sm:$0xff] %v408_v1 }
  0x12   :  { %294 = vst [vmem:[%s923_s1 + $0x80] sm:$0xff] %v403_v0  ;;  %295 = vst [vmem:[%s923_s1 + $0x280] sm:$0xff] %v408_v1 }
  0x13   :  { %296 = vst [vmem:[%s923_s1 + $0x180] sm:$0xff] %v403_v0  ;;  %297 = vst [vmem:[%s923_s1 + $0x380] sm:$0xff] %v408_v1 }
  0x14   :  { %298 = vst [vmem:[%s923_s1 + $0x90] sm:$0xff] %v403_v0  ;;  %299 = vst [vmem:[%s923_s1 + $0x290] sm:$0xff] %v408_v1 }
  0x15   :  { %300 = vst [vmem:[%s923_s1 + $0x190] sm:$0xff] %v403_v0  ;;  %301 = vst [vmem:[%s923_s1 + $0x390] sm:$0xff] %v408_v1 }
  0x16   :  { %302 = vst [vmem:[%s923_s1 + $0xa0] sm:$0xff] %v403_v0  ;;  %303 = vst [vmem:[%s923_s1 + $0x2a0] sm:$0xff] %v408_v1 }
  0x17   :  { %304 = vst [vmem:[%s923_s1 + $0x1a0] sm:$0xff] %v403_v0  ;;  %305 = vst [vmem:[%s923_s1 + $0x3a0] sm:$0xff] %v408_v1 }
  0x18   :  { %306 = vst [vmem:[%s923_s1 + $0xb0] sm:$0xff] %v403_v0  ;;  %307 = vst [vmem:[%s923_s1 + $0x2b0] sm:$0xff] %v408_v1 }
  0x19   :  { %308 = vst [vmem:[%s923_s1 + $0x1b0] sm:$0xff] %v403_v0  ;;  %309 = vst [vmem:[%s923_s1 + $0x3b0] sm:$0xff] %v408_v1 }
  0x1a   :  { %310 = vst [vmem:[%s923_s1 + $0xc0] sm:$0xff] %v403_v0  ;;  %311 = vst [vmem:[%s923_s1 + $0x2c0] sm:$0xff] %v408_v1 }
  0x1b   :  { %312 = vst [vmem:[%s923_s1 + $0x1c0] sm:$0xff] %v403_v0  ;;  %313 = vst [vmem:[%s923_s1 + $0x3c0] sm:$0xff] %v408_v1 }
  0x1c   :  { %314 = vst [vmem:[%s923_s1 + $0xd0] sm:$0xff] %v403_v0  ;;  %315 = vst [vmem:[%s923_s1 + $0x2d0] sm:$0xff] %v408_v1 }
  0x1d   :  { %316 = vst [vmem:[%s923_s1 + $0x1d0] sm:$0xff] %v403_v0  ;;  %317 = vst [vmem:[%s923_s1 + $0x3d0] sm:$0xff] %v408_v1 }
  0x1e   :  { %318 = vst [vmem:[%s923_s1 + $0xe0] sm:$0xff] %v403_v0  ;;  %319 = vst [vmem:[%s923_s1 + $0x2e0] sm:$0xff] %v408_v1 }
  0x1f   :  { %320 = vst [vmem:[%s923_s1 + $0x1e0] sm:$0xff] %v403_v0  ;;  %321 = vst [vmem:[%s923_s1 + $0x3e0] sm:$0xff] %v408_v1 }
  0x20   :  { %322 = vst [vmem:[%s923_s1 + $0xf0] sm:$0xff] %v403_v0  ;;  %323 = vst [vmem:[%s923_s1 + $0x2f0] sm:$0xff] %v408_v1 }
  0x21   :  { %324 = vst [vmem:[%s923_s1 + $0x1f0] sm:$0xff] %v403_v0  ;;  %325 = vst [vmem:[%s923_s1 + $0x3f0] sm:$0xff] %v408_v1 }
  0x22   :  { %326 = vst [vmem:[%s923_s1 + $0x8] sm:$0xff] %v403_v0  ;;  %327 = vst [vmem:[%s923_s1 + $0x208] sm:$0xff] %v408_v1 }
  0x23   :  { %328 = vst [vmem:[%s923_s1 + $0x108] sm:$0xff] %v403_v0  ;;  %329 = vst [vmem:[%s923_s1 + $0x308] sm:$0xff] %v408_v1 }
  0x24   :  { %330 = vst [vmem:[%s923_s1 + $0x18] sm:$0xff] %v403_v0  ;;  %331 = vst [vmem:[%s923_s1 + $0x218] sm:$0xff] %v408_v1 }
  0x25   :  { %332 = vst [vmem:[%s923_s1 + $0x118] sm:$0xff] %v403_v0  ;;  %333 = vst [vmem:[%s923_s1 + $0x318] sm:$0xff] %v408_v1 }
  0x26   :  { %334 = vst [vmem:[%s923_s1 + $0x28] sm:$0xff] %v403_v0  ;;  %335 = vst [vmem:[%s923_s1 + $0x228] sm:$0xff] %v408_v1 }
  0x27   :  { %336 = vst [vmem:[%s923_s1 + $0x128] sm:$0xff] %v403_v0  ;;  %337 = vst [vmem:[%s923_s1 + $0x328] sm:$0xff] %v408_v1 }
  0x28   :  { %338 = vst [vmem:[%s923_s1 + $0x38] sm:$0xff] %v403_v0  ;;  %339 = vst [vmem:[%s923_s1 + $0x238] sm:$0xff] %v408_v1 }
  0x29   :  { %340 = vst [vmem:[%s923_s1 + $0x138] sm:$0xff] %v403_v0  ;;  %341 = vst [vmem:[%s923_s1 + $0x338] sm:$0xff] %v408_v1 }
  0x2a   :  { %342 = vst [vmem:[%s923_s1 + $0x48] sm:$0xff] %v403_v0  ;;  %343 = vst [vmem:[%s923_s1 + $0x248] sm:$0xff] %v408_v1 }
  0x2b   :  { %344 = vst [vmem:[%s923_s1 + $0x148] sm:$0xff] %v403_v0  ;;  %345 = vst [vmem:[%s923_s1 + $0x348] sm:$0xff] %v408_v1 }
  0x2c   :  { %346 = vst [vmem:[%s923_s1 + $0x58] sm:$0xff] %v403_v0  ;;  %347 = vst [vmem:[%s923_s1 + $0x258] sm:$0xff] %v408_v1 }
  0x2d   :  { %348 = vst [vmem:[%s923_s1 + $0x158] sm:$0xff] %v403_v0  ;;  %349 = vst [vmem:[%s923_s1 + $0x358] sm:$0xff] %v408_v1 }
  0x2e   :  { %350 = vst [vmem:[%s923_s1 + $0x68] sm:$0xff] %v403_v0  ;;  %351 = vst [vmem:[%s923_s1 + $0x268] sm:$0xff] %v408_v1 }
  0x2f   :  { %352 = vst [vmem:[%s923_s1 + $0x168] sm:$0xff] %v403_v0  ;;  %353 = vst [vmem:[%s923_s1 + $0x368] sm:$0xff] %v408_v1 }
  0x30   :  { %354 = vst [vmem:[%s923_s1 + $0x78] sm:$0xff] %v403_v0  ;;  %355 = vst [vmem:[%s923_s1 + $0x278] sm:$0xff] %v408_v1 }
  0x31   :  { %356 = vst [vmem:[%s923_s1 + $0x178] sm:$0xff] %v403_v0  ;;  %357 = vst [vmem:[%s923_s1 + $0x378] sm:$0xff] %v408_v1 }
  0x32   :  { %358 = vst [vmem:[%s923_s1 + $0x88] sm:$0xff] %v403_v0  ;;  %359 = vst [vmem:[%s923_s1 + $0x288] sm:$0xff] %v408_v1 }
  0x33   :  { %360 = vst [vmem:[%s923_s1 + $0x188] sm:$0xff] %v403_v0  ;;  %361 = vst [vmem:[%s923_s1 + $0x388] sm:$0xff] %v408_v1 }
  0x34   :  { %362 = vst [vmem:[%s923_s1 + $0x98] sm:$0xff] %v403_v0  ;;  %363 = vst [vmem:[%s923_s1 + $0x298] sm:$0xff] %v408_v1 }
  0x35   :  { %364 = vst [vmem:[%s923_s1 + $0x198] sm:$0xff] %v403_v0  ;;  %365 = vst [vmem:[%s923_s1 + $0x398] sm:$0xff] %v408_v1 }
  0x36   :  { %366 = vst [vmem:[%s923_s1 + $0xa8] sm:$0xff] %v403_v0  ;;  %367 = vst [vmem:[%s923_s1 + $0x2a8] sm:$0xff] %v408_v1 }
  0x37   :  { %368 = vst [vmem:[%s923_s1 + $0x1a8] sm:$0xff] %v403_v0  ;;  %369 = vst [vmem:[%s923_s1 + $0x3a8] sm:$0xff] %v408_v1 }
  0x38   :  { %370 = vst [vmem:[%s923_s1 + $0xb8] sm:$0xff] %v403_v0  ;;  %371 = vst [vmem:[%s923_s1 + $0x2b8] sm:$0xff] %v408_v1 }
  0x39   :  { %372 = vst [vmem:[%s923_s1 + $0x1b8] sm:$0xff] %v403_v0  ;;  %373 = vst [vmem:[%s923_s1 + $0x3b8] sm:$0xff] %v408_v1 }
  0x3a   :  { %374 = vst [vmem:[%s923_s1 + $0xc8] sm:$0xff] %v403_v0  ;;  %375 = vst [vmem:[%s923_s1 + $0x2c8] sm:$0xff] %v408_v1 }
  0x3b   :  { %376 = vst [vmem:[%s923_s1 + $0x1c8] sm:$0xff] %v403_v0  ;;  %377 = vst [vmem:[%s923_s1 + $0x3c8] sm:$0xff] %v408_v1 }
  0x3c   :  { %378 = vst [vmem:[%s923_s1 + $0xd8] sm:$0xff] %v403_v0  ;;  %379 = vst [vmem:[%s923_s1 + $0x2d8] sm:$0xff] %v408_v1 }
  0x3d   :  { %380 = vst [vmem:[%s923_s1 + $0x1d8] sm:$0xff] %v403_v0  ;;  %381 = vst [vmem:[%s923_s1 + $0x3d8] sm:$0xff] %v408_v1 }
  0x3e   :  { %382 = vst [vmem:[%s923_s1 + $0xe8] sm:$0xff] %v403_v0  ;;  %383 = vst [vmem:[%s923_s1 + $0x2e8] sm:$0xff] %v408_v1 }
  0x3f   :  { %384 = vst [vmem:[%s923_s1 + $0x1e8] sm:$0xff] %v403_v0  ;;  %385 = vst [vmem:[%s923_s1 + $0x3e8] sm:$0xff] %v408_v1 }
  0x40   :  { %386 = vst [vmem:[%s923_s1 + $0xf8] sm:$0xff] %v403_v0  ;;  %387 = vst [vmem:[%s923_s1 + $0x2f8] sm:$0xff] %v408_v1 }
  0x41   :  { %388 = vst [vmem:[%s923_s1 + $0x1f8] sm:$0xff] %v403_v0  ;;  %389 = vst [vmem:[%s923_s1 + $0x3f8] sm:$0xff] %v408_v1 }

// kernel: yolov4_loss.1
= control target key start
LH: loop header
LB: loop body
LE: loop exit
PB: predicated region body
PF: predicated region fallthrough
CT: control target
= control target key end

     0   :  { %s627_s6 = smov 0   ;;  %s629_s7 = smov 0   ;;  %s794_s0 = inlined_call_operand.vmem [shape: f32[19,16,128], index: 0, kind: input, shape index: {}]   ;;  %s795_s1 = inlined_call_operand.vmem [shape: f32[8,8,128], index: 1, kind: output, shape index: {}]  }
   0x1   :  { %s631_s8 = smov 0   ;;  %s633_s9 = smov 0  }
   0x2   :  { %s635_s10 = smov 0  }
   0x3 LB: > { %s23_s11 = sadd.s32 1, %s610_s9  ;;  %p39_p1 = scmp.ne.s32.totalorder %s602_s7, %s598_s6  ;;  %s614_s10 = sphi %s635_s10, %s11_s10   ;;  %s610_s9 = sphi %s633_s9, %s799_s9   ;;  %s606_s8 = sphi %s631_s8, %s798_s8   ;;  %s602_s7 = sphi %s629_s7, %s797_s7   ;;  %s598_s6 = sphi %s627_s6, %s796_s6  }
   0x4   : > { %p25_p0 = scmp.ge.s32.totalorder %s23_s11, 2  ;;  %p40_p2 = scmp.eq.s32.totalorder %s614_s10, 0 }
   0x5   : > { %s32_s13 = sadd.s32 1, %s602_s7  ;;  %p478_p5 = scmp.ge.s32.totalorder %s614_s10, 2 }
   0x6   : > { %s801_s11 = smov (%p25_p0, %s23_s11), 0  ;;  %p41_p3 = por %p40_p2, %p39_p1 }
   0x7   : > { %s29_s12 = ssub.s32 %s610_s9, %s801_s11  ;;  %91 = sbr.rel (%p478_p5) target bundleno = 28 (0x1c), region = 16 }
   0x8   : > { %p30_p4 = scmp.eq.s32.totalorder %s29_s12, 0 }
   0xa   : > { %s662_s14 = scalar_select %p30_p4, %s602_s7, %s32_s13  }
   0xe   : > { %94 = sbr.rel (!%p41_p3) target bundleno = 28 (0x1c), region = 20  ;;  %s96_s15 = sand.u32 (%p41_p3), 1, %s602_s7  }
   0xf   : > { %s479_s16 = sshll.u32 (%p41_p3), %s610_s9, 3  ;;  %s509_s17 = smul.u32 (%p41_p3), 152, %s96_s15 }
  0x10   : > { %s670_s20 = scalar_lea.vmem (%p41_p3), %s794_s0, %s479_s16 }
  0x11   : > { %v165_v0 = vld [vmem:[%s670_s20] sm:$0xff] (%p41_p3)  ;;  %v167_v1 = vld [vmem:[%s670_s20 + $0x10] sm:$0xff] (%p41_p3)  ;;  %s678_s21 = scalar_lea.vmem (%p41_p3), [#allocation2], %s509_s17 }
  0x12   : > { %v169_v2 = vld [vmem:[%s670_s20 + $0x20] sm:$0xff] (%p41_p3)  ;;  %v171_v3 = vld [vmem:[%s670_s20 + $0x30] sm:$0xff] (%p41_p3)  ;;  %166 = vst [vmem:[%s678_s21] sm:$0xff] (%p41_p3), %v165_v0  ;;  %168 = vst [vmem:[%s678_s21 + $0x8] sm:$0xff] (%p41_p3), %v167_v1 }
  0x13   : > { %v173_v4 = vld [vmem:[%s670_s20 + $0x40] sm:$0xff] (%p41_p3)  ;;  %v175_v5 = vld [vmem:[%s670_s20 + $0x50] sm:$0xff] (%p41_p3)  ;;  %170 = vst [vmem:[%s678_s21 + $0x10] sm:$0xff] (%p41_p3), %v169_v2  ;;  %172 = vst [vmem:[%s678_s21 + $0x18] sm:$0xff] (%p41_p3), %v171_v3 }
  0x14   : > { %174 = vst [vmem:[%s678_s21 + $0x20] sm:$0xff] (%p41_p3), %v173_v4  ;;  %176 = vst [vmem:[%s678_s21 + $0x28] sm:$0xff] (%p41_p3), %v175_v5  ;;  %v177_v6 = vld [vmem:[%s670_s20 + $0x60] sm:$0xff] (%p41_p3)  ;;  %v179_v7 = vld [vmem:[%s670_s20 + $0x70] sm:$0xff] (%p41_p3) }
  0x15   : > { %v181_v8 = vld [vmem:[%s670_s20 + $0x80] sm:$0xff]  ;;  %178 = vst [vmem:[%s678_s21 + $0x30] sm:$0xff] %v177_v6  ;;  %180 = vst [vmem:[%s678_s21 + $0x38] sm:$0xff] %v179_v7  ;;  %v183_v9 = vld [vmem:[%s670_s20 + $0x90] sm:$0xff] }
  0x16   : > { %182 = vst [vmem:[%s678_s21 + $0x40] sm:$0xff] %v181_v8  ;;  %v185_v10 = vld [vmem:[%s670_s20 + $0xa0] sm:$0xff]  ;;  %v187_v11 = vld [vmem:[%s670_s20 + $0xb0] sm:$0xff]  ;;  %184 = vst [vmem:[%s678_s21 + $0x48] sm:$0xff] %v183_v9 }
  0x17   : > { %186 = vst [vmem:[%s678_s21 + $0x50] sm:$0xff] %v185_v10  ;;  %188 = vst [vmem:[%s678_s21 + $0x58] sm:$0xff] %v187_v11  ;;  %v189_v12 = vld [vmem:[%s670_s20 + $0xc0] sm:$0xff]  ;;  %v191_v13 = vld [vmem:[%s670_s20 + $0xd0] sm:$0xff] }
  0x18   : > { %v193_v14 = vld [vmem:[%s670_s20 + $0xe0] sm:$0xff]  ;;  %190 = vst [vmem:[%s678_s21 + $0x60] sm:$0xff] %v189_v12  ;;  %192 = vst [vmem:[%s678_s21 + $0x68] sm:$0xff] %v191_v13  ;;  %v195_v15 = vld [vmem:[%s670_s20 + $0xf0] sm:$0xff] }
  0x19   : > { %194 = vst [vmem:[%s678_s21 + $0x70] sm:$0xff] %v193_v14  ;;  %v197_v16 = vld [vmem:[%s670_s20 + $0x100] sm:$0xff]  ;;  %v199_v17 = vld [vmem:[%s670_s20 + $0x110] sm:$0xff]  ;;  %196 = vst [vmem:[%s678_s21 + $0x78] sm:$0xff] %v195_v15 }
  0x1a   : > { %198 = vst [vmem:[%s678_s21 + $0x80] sm:$0xff] %v197_v16  ;;  %200 = vst [vmem:[%s678_s21 + $0x88] sm:$0xff] %v199_v17  ;;  %v201_v18 = vld [vmem:[%s670_s20 + $0x120] sm:$0xff] }
  0x1b   : > { %202 = vst [vmem:[%s678_s21 + $0x90] sm:$0xff] %v201_v18 }
  0x1c PF: > { %p480_p6 = scmp.ge.s32.totalorder %s614_s10, 1  ;;  %p207_p7 = scmp.lt.s32.totalorder %s614_s10, 3 }
  0x1e   : > { %p208_p8 = pnand %p480_p6, %p207_p7 }
  0x1f   : > { %s481_s22 = sshll.u32 (!%p208_p8), %s606_s8, 2  ;;  %s214_s23 = sand.u32 (!%p208_p8), 1, %s598_s6   ;;  %v616_v26 = vmov (!%p208_p8), 0.0  }
  0x20   : > { %211 = sbr.rel (%p208_p8) target bundleno = 92 (0x5c), region = 58  ;;  %p235_p9 = scmp.lt.s32.totalorder (!%p208_p8), %s481_s22, 7 }
  0x21   : > { %s510_s24 = smul.u32 (!%p208_p8), 152, %s214_s23 }
  0x23   : > { %s716_s26 = scalar_lea.vmem (!%p208_p8), [#allocation2], %s510_s24 }
  0x24   : > { %v248_v19 = vld [vmem:[%s716_s26] sm:$0xff] (!%p208_p8)  ;;  %v483_v20 = vld [vmem:[%s716_s26 + $0x8] sm:$0xff] (!%p208_p8)  ;;  %v484_v21 = vld [vmem:[%s716_s26 + $0x10] sm:$0xff] (!%p208_p8) }
  0x25   : > { %v485_v22 = vld [vmem:[%s716_s26 + $0x18] sm:$0xff] (!%p208_p8)  ;;  %v486_v23 = vld [vmem:[%s716_s26 + $0x20] sm:$0xff] (!%p208_p8)  ;;  %v487_v24 = vld [vmem:[%s716_s26 + $0x28] sm:$0xff] (!%p208_p8)  ;;  %v269_v25 = vsub.f32 (!%p208_p8), %v484_v21, %v248_v19 }
  0x26   : > { %v488_v27 = vld [vmem:[%s716_s26 + $0x30] sm:$0xff] (!%p208_p8)  ;;  %v489_v28 = vld [vmem:[%s716_s26 + $0x38] sm:$0xff] (!%p208_p8)  ;;  %v270_v29 = vsub.f32 (!%p208_p8), %v485_v22, %v483_v20  ;;  %v276_v30 = vmax.f32 (!%p208_p8), %v486_v23, %v248_v19  ;;  %v280_v31 = vmax.f32 (!%p208_p8), %v487_v24, %v483_v20  ;;  %v287_v32 = vmin.f32 (!%p208_p8), %v486_v23, %v248_v19  ;;  %v734_v37 = vld [vmem:[%s716_s26 + $0x40] sm:$0xff] (!%p208_p8) }
  0x27   : > { %s803_s22 = smov (!%p235_p9, %s481_s22), 7  ;;  %v272_v33 = vsub.f32 %v488_v27, %v486_v23  ;;  %v273_v34 = vsub.f32 %v489_v28, %v487_v24  ;;  %v275_v35 = vmin.f32 %v488_v27, %v484_v21  ;;  %v279_v36 = vmin.f32 %v489_v28, %v485_v22  ;;  %v740_v48 = vld [vmem:[%s716_s26 + $0x58] sm:$0xff]  ;;  %v743_v55 = vld [vmem:[%s716_s26 + $0x60] sm:$0xff]  ;;  %v748_v63 = vld [vmem:[%s716_s26 + $0x68] sm:$0xff] }
  0x28   : > { %s482_s25 = sshll.u32 %s803_s22, 3  ;;  %v271_v38 = vmul.f32 %v270_v29, %v269_v25  ;;  %v286_v39 = vmax.f32 %v488_v27, %v484_v21  ;;  %v290_v40 = vmax.f32 %v489_v28, %v485_v22  ;;  %v291_v41 = vmin.f32 %v487_v24, %v483_v20  ;;  %v751_v1 = vld [vmem:[%s716_s26 + $0x70] sm:$0xff]  ;;  %v491_v24 = vld [vmem:[%s716_s26 + $0x48] sm:$0xff] }
  0x29   : > { %s724_s29 = scalar_lea.vmem %s795_s1, %s482_s25  ;;  %v274_v42 = vmul.f32 %v273_v34, %v272_v33  ;;  %v277_v43 = vsub.f32 %v275_v35, %v276_v30  ;;  %v281_v44 = vsub.f32 %v279_v36, %v280_v31  ;;  %v307_v47 = vand.u32 2147483647, %v734_v37  ;;  %v494_v34 = vld [vmem:[%s716_s26 + $0x78] sm:$0xff]  ;;  %v496_v35 = vld [vmem:[%s716_s26 + $0x80] sm:$0xff] }
  0x2a   : > { %244 = vst [vmem:[%s724_s29] sm:$0xff] %v616_v26  ;;  %245 = vst [vmem:[%s724_s29 + $0x8] sm:$0xff] %v616_v26  ;;  %v288_v45 = vsub.f32 %v286_v39, %v287_v32  ;;  %v292_v46 = vsub.f32 %v290_v40, %v291_v41  ;;  %v322_v57 = vand.u32 2147483647, %v740_v48  ;;  %v337_v62 = vand.u32 2147483647, %v743_v55 }
  0x2b   : > { %246 = vst [vmem:[%s724_s29 + $0x10] sm:$0xff] %v616_v26  ;;  %247 = vst [vmem:[%s724_s29 + $0x18] sm:$0xff] %v616_v26  ;;  %v278_v49 = vmax.f32 %v277_v43, 0.0  ;;  %v282_v50 = vmax.f32 %v281_v44, 0.0  ;;  %v284_v51 = vadd.f32 %v274_v42, %v271_v38  ;;  %v308_v54 = vsub.f32 0.0, %v307_v47  ;;  %v498_v44 = vld [vmem:[%s716_s26 + $0x88] sm:$0xff] }
  0x2c   : > { %v289_v52 = vmax.f32 %v288_v45, 0.0  ;;  %v293_v53 = vmax.f32 %v292_v46, 0.0  ;;  %v323_v61 = vsub.f32 0.0, %v322_v57  ;;  %v338_v4 = vsub.f32 0.0, %v337_v62 }
  0x2d   : > { %v283_v56 = vmul.f32 %v282_v50, %v278_v49  ;;  %v309_v59 = vmul.f32 1.442695, %v308_v54  ;;  %v353_v5 = vand.u32 2147483647, %v748_v63  ;;  %v369_v7 = vand.u32 2147483647, %v751_v1 }
  0x2e   : > { %v294_v58 = vmul.f32 %v293_v53, %v289_v52  ;;  %v324_v3 = vmul.f32 1.442695, %v323_v61  ;;  %v339_v6 = vmul.f32 1.442695, %v338_v4  ;;  %v304_v27 = vmax.f32 %v734_v37, 0.0 }
  0x2f   : > { %v285_v60 = vsub.f32 %v284_v51, %v283_v56  ;;  %552 = vpow2.f32 %v309_v59  ;;  %v354_v8 = vsub.f32 0.0, %v353_v5  ;;  %v370_v9 = vsub.f32 0.0, %v369_v7  ;;  %v492_v5 = vld [vmem:[%s716_s26 + $0x50] sm:$0xff] }
  0x30   : > { %v297_v0 = vmax.f32 %v294_v58, 1e-12  ;;  %v305_v28 = vmul.f32 %v491_v24, %v734_v37  ;;  %v319_v40 = vmax.f32 %v740_v48, 0.0  ;;  %v320_v37 = vmul.f32 %v494_v34, %v740_v48  ;;  %v500_v48 = vld [vmem:[%s716_s26 + $0x90] sm:$0xff] }
  0x31   : > { %v295_v2 = vmax.f32 %v285_v60, 1e-12  ;;  %v355_v10 = vmul.f32 1.442695, %v354_v8  ;;  %v371_v11 = vmul.f32 1.442695, %v370_v9  ;;  %v300_v12 = vsub.f32 %v294_v58, %v285_v60 }
  0x32   : > { %554 = vrcp.f32 %v297_v0  ;;  %v384_v33 = vld [vmem:[%s724_s29] sm:$0xff]  ;;  %v306_v38 = vsub.f32 %v304_v27, %v305_v28  ;;  %v334_v42 = vmax.f32 %v743_v55, 0.0  ;;  %v335_v43 = vmul.f32 %v496_v35, %v743_v55  ;;  %v501_v59 = vld [vmem:[%s724_s29 + $0x8] sm:$0xff] }
  0x33   : > { %556 = vrcp.f32 %v295_v2  ;;  %v350_v47 = vmax.f32 %v748_v63, 0.0  ;;  %v351_v49 = vmul.f32 %v498_v44, %v748_v63  ;;  %v321_v52 = vsub.f32 %v319_v40, %v320_v37 }
  0x34   : > { %558 = vpow2.f32 %v324_v3  ;;  %v336_v54 = vsub.f32 %v334_v42, %v335_v43  ;;  %v380_v57 = vsub.f32 1.0, %v491_v24  ;;  %v366_v60 = vmax.f32 %v751_v1, 0.0 }
  0x35   : > { %560 = vpow2.f32 %v339_v6  ;;  %v352_v55 = vsub.f32 %v350_v47, %v351_v49  ;;  %v367_v61 = vmul.f32 %v500_v48, %v751_v1  ;;  %v503_v1 = vld [vmem:[%s724_s29 + $0x10] sm:$0xff] }
  0x36   : > { %562 = vpow2.f32 %v355_v10 }
  0x37   : > { %564 = vpow2.f32 %v371_v11  ;;  %v368_v8 = vsub.f32 %v366_v60, %v367_v61 }
  0x39   : > { %v553_v13 = vpop.eup %552 }
  0x3a   : > { %v311_v14 = vadd.f32 1.0, %v553_v13 }
  0x3c   : > { %v555_v15 = vpop.eup %554  ;;  %566 = vlog2.f32 %v311_v14 }
  0x3d   : > { %v557_v16 = vpop.eup %556  ;;  %v301_v17 = vmul.f32 %v555_v15, %v300_v12 }
  0x3e   : > { %v559_v18 = vpop.eup %558  ;;  %v299_v19 = vmul.f32 %v557_v16, %v283_v56  ;;  %v505_v16 = vld [vmem:[%s724_s29 + $0x18] sm:$0xff] }
  0x3f   : > { %v561_v20 = vpop.eup %560  ;;  %v326_v21 = vadd.f32 1.0, %v559_v18 }
  0x40   : > { %v302_v22 = vsub.f32 %v299_v19, %v301_v17  ;;  %v341_v23 = vadd.f32 1.0, %v561_v20  ;;  %v563_v25 = vpop.eup %562 }
  0x41   : > { %568 = vlog2.f32 %v326_v21  ;;  %v565_v29 = vpop.eup %564  ;;  %v357_v30 = vadd.f32 1.0, %v563_v25 }
  0x42   : > { %v303_v26 = vsub.f32 1.0, %v302_v22  ;;  %570 = vlog2.f32 %v341_v23  ;;  %v373_v32 = vadd.f32 1.0, %v565_v29 }
  0x43   : > { %572 = vlog2.f32 %v357_v30 }
  0x44   : > { %v378_v31 = vmul.f32 %v491_v24, %v303_v26  ;;  %574 = vlog2.f32 %v373_v32 }
  0x46   : > { %v386_v36 = vadd.f32 %v384_v33, %v378_v31  ;;  %v567_v39 = vpop.eup %566 }
  0x47   : > { %v313_v41 = vmul.f32 0.6931472, %v567_v39 }
  0x48   : > { %387 = vst [vmem:[%s724_s29] sm:$0xff] %v386_v36 }
  0x49   : > { %v314_v45 = vadd.f32 %v313_v41, %v306_v38 }
  0x4b   : > { %v569_v46 = vpop.eup %568  ;;  %v379_v51 = vmul.f32 %v491_v24, %v314_v45  ;;  %v381_v4 = vmul.f32 %v380_v57, %v314_v45 }
  0x4c   : > { %v571_v50 = vpop.eup %570  ;;  %v328_v53 = vmul.f32 0.6931472, %v569_v46 }
  0x4d   : > { %v343_v56 = vmul.f32 0.6931472, %v571_v50  ;;  %v573_v58 = vpop.eup %572  ;;  %v391_v62 = vadd.f32 %v501_v59, %v379_v51  ;;  %v382_v10 = vmul.f32 %v492_v5, %v381_v4 }
  0x4e   : > { %v329_v63 = vadd.f32 %v328_v53, %v321_v52  ;;  %v359_v2 = vmul.f32 0.6931472, %v573_v58  ;;  %v575_v3 = vpop.eup %574 }
  0x4f   : > { %v344_v0 = vadd.f32 %v343_v56, %v336_v54  ;;  %502 = vst [vmem:[%s724_s29 + $0x8] sm:$0xff] %v391_v62  ;;  %v375_v9 = vmul.f32 0.6931472, %v575_v3  ;;  %v396_v13 = vadd.f32 %v503_v1, %v382_v10 }
  0x50   : > { %v360_v7 = vadd.f32 %v359_v2, %v352_v55 }
  0x51   : > { %v345_v6 = vadd.f32 %v344_v0, %v329_v63  ;;  %v376_v12 = vadd.f32 %v375_v9, %v368_v8  ;;  %504 = vst [vmem:[%s724_s29 + $0x10] sm:$0xff] %v396_v13 }
  0x53   : > { %v361_v11 = vadd.f32 %v360_v7, %v345_v6 }
  0x55   : > { %v377_v14 = vadd.f32 %v376_v12, %v361_v11 }
  0x57   : > { %v383_v15 = vmul.f32 %v491_v24, %v377_v14 }
  0x59   : > { %v401_v17 = vadd.f32 %v505_v16, %v383_v15 }
  0x5b   : > { %506 = vst [vmem:[%s724_s29 + $0x18] sm:$0xff] %v401_v17 }
  0x5c PF: > { %s11_s10 = sadd.s32 1, %s614_s10   ;;  %s796_s6 = smov %s602_s7 }
  0x5d   : > { %p8_p10 = scmp.ge.s32.totalorder %s11_s10, 4   ;;  %s797_s7 = smov %s662_s14 }
  0x5e   : > { %s798_s8 = smov %s610_s9  ;;  %s799_s9 = smov %s801_s11 }
  0x5f   :  { %10 = sbr.rel (!%p8_p10) target bundleno = 3 (0x3), region = 122 }

</bundles_post_ra>
